<compile_context>
chip_gen: v5e
topology: v5e:2x2
jax: 0.10.0
libtpu: 0.0.40
codegen_flags: <defaults>
</compile_context>

<pallas_src>
import functools
import math

import jax
import jax.numpy as jnp
from jax import lax
from jax.experimental import pallas as pl
from jax.experimental.pallas import tpu as pltpu

_TARGET_BLOCK_BYTES = 2 << 20   # ~2 MiB input blocks: measured ~85% of HBM roofline
_MIN_GRID_STEPS = 8             # keep >= ~8 grid steps for megacore + pipelining


def _round_up(x, m):
    return ((x + m - 1) // m) * m


def _round_down(x, m):
    return (x // m) * m


def _sublane(dtype):
    # dtype-specific sublane packing: 8 rows (4-byte), 16 (bf16/f16), 32 (int8/fp8)
    return {4: 8, 2: 16, 1: 32}.get(jnp.dtype(dtype).itemsize, 8)


def _pick_tile(extent, unit_bytes, align, *, target_bytes=_TARGET_BLOCK_BYTES,
               min_steps=_MIN_GRID_STEPS):
    """Tile size along one *independent* axis.

    Multiple of `align` (or the full extent), sized so the block is roughly
    `target_bytes`, but capped so the grid keeps >= `min_steps` steps whenever
    the extent allows it (v7x dual-TensorCore sharding + double buffering).
    """
    min_steps = max(1, min(min_steps, extent))
    by_bytes = max(align, _round_down(max(target_bytes // max(unit_bytes, 1), 1), align))
    by_steps = max(align, _round_up(pl.cdiv(extent, min_steps), align))
    tile = min(by_bytes, by_steps)
    return extent if tile >= extent else tile


def _vmem_limit(block_bytes):
    # in + out blocks, double-buffered, plus slack for f32 temporaries.
    need = 4 * block_bytes + (4 << 20)
    return int(min(128 << 20, max(32 << 20, need)))


# ----------------------------------------------------------------------------
# Kernel A: channels_last  --  rows (tm, C), normalize over last (lane) dim C
# ----------------------------------------------------------------------------
def _ln_channels_last_kernel(x_ref, w_ref, b_ref, o_ref, *, eps, inv_c):
    x = x_ref[...].astype(jnp.float32)                      # (tm, C)
    mean = jnp.sum(x, axis=-1, keepdims=True) * inv_c
    ex2 = jnp.sum(x * x, axis=-1, keepdims=True) * inv_c
    # single-pass variance; clamp guards f32 cancellation for large-mean inputs
    var = jnp.maximum(ex2 - mean * mean, 0.0)
    inv = lax.rsqrt(var + eps)
    y = (x - mean) * inv * w_ref[...] + b_ref[...]          # w/b already f32
    o_ref[...] = y.astype(o_ref.dtype)


@functools.partial(jax.jit, static_argnames=("eps",))
def layer_norm_channels_last(x, weight, bias, *, eps=1e-6):
    """F.layer_norm(x, (C,), weight, bias, eps) for x of shape (..., C)."""
    orig_shape = x.shape
    C = orig_shape[-1]
    M = int(math.prod(orig_shape[:-1])) if len(orig_shape) > 1 else 1
    x2 = x.reshape(M, C)
    itemsize = jnp.dtype(x.dtype).itemsize

    tm = _pick_tile(M, C * itemsize, _sublane(x.dtype))
    grid = (pl.cdiv(M, tm),)                                # ragged last block is masked

    w2 = weight.reshape(1, C).astype(jnp.float32)
    b2 = bias.reshape(1, C).astype(jnp.float32)

    # TODO(synk): for C not a multiple of 128 the output store is lane-masked
    # (vst.msk); a packed multi-row-per-lane-group layout would make it dense.
    out = pl.pallas_call(
        functools.partial(_ln_channels_last_kernel, eps=eps, inv_c=1.0 / C),
        out_shape=jax.ShapeDtypeStruct((M, C), x.dtype),
        grid_spec=pltpu.PrefetchScalarGridSpec(
            num_scalar_prefetch=0,
            grid=grid,
            in_specs=[
                pl.BlockSpec((tm, C), lambda i: (i, 0)),
                pl.BlockSpec((1, C), lambda i: (0, 0)),
                pl.BlockSpec((1, C), lambda i: (0, 0)),
            ],
            out_specs=pl.BlockSpec((tm, C), lambda i: (i, 0)),
        ),
        compiler_params=pltpu.CompilerParams(
            dimension_semantics=("parallel",),
            vmem_limit_bytes=_vmem_limit(tm * C * itemsize),
        ),
    )(x2, w2, b2)
    return out.reshape(orig_shape)


# ----------------------------------------------------------------------------
# Kernel B: channels_first  --  blocks (bn, C, t), normalize over C (axis=1).
#           H*W stays in the lane axis -> lane-dense loads/stores, no transpose.
# ----------------------------------------------------------------------------
def _ln_channels_first_kernel(x_ref, w_ref, b_ref, o_ref, *, eps, inv_c):
    x = x_ref[...].astype(jnp.float32)                      # (bn, C, t)
    mean = jnp.sum(x, axis=1, keepdims=True) * inv_c
    ex2 = jnp.sum(x * x, axis=1, keepdims=True) * inv_c
    var = jnp.maximum(ex2 - mean * mean, 0.0)
    inv = lax.rsqrt(var + eps)
    y = (x - mean) * inv * w_ref[...] + b_ref[...]          # w/b already f32, (1,C,1)
    o_ref[...] = y.astype(o_ref.dtype)


@functools.partial(jax.jit, static_argnames=("eps",))
def layer_norm_channels_first(x, weight, bias, *, eps=1e-6):
    """channels_first LayerNorm for x of shape (N, C, *spatial)."""
    N, C = x.shape[0], x.shape[1]
    HW = int(math.prod(x.shape[2:])) if x.ndim > 2 else 1
    x3 = x.reshape(N, C, HW)
    itemsize = jnp.dtype(x.dtype).itemsize

    slab = C * HW * itemsize                                # one image, full spatial
    if slab <= _TARGET_BLOCK_BYTES:
        # whole spatial per block; fold several images per block so blocks
        # still reach ~MiB scale (small-HW case from the perf review)
        t = HW
        bn = _pick_tile(N, slab, 1, min_steps=min(_MIN_GRID_STEPS, N))
    else:
        bn = 1
        t = _pick_tile(HW, C * itemsize, 128,
                       min_steps=max(1, pl.cdiv(_MIN_GRID_STEPS, N)))

    grid = (pl.cdiv(N, bn), pl.cdiv(HW, t))                 # ragged blocks are masked

    w3 = weight.reshape(1, C, 1).astype(jnp.float32)
    b3 = bias.reshape(1, C, 1).astype(jnp.float32)

    out = pl.pallas_call(
        functools.partial(_ln_channels_first_kernel, eps=eps, inv_c=1.0 / C),
        out_shape=jax.ShapeDtypeStruct((N, C, HW), x.dtype),
        grid_spec=pltpu.PrefetchScalarGridSpec(
            num_scalar_prefetch=0,
            grid=grid,
            in_specs=[
                pl.BlockSpec((bn, C, t), lambda i, j: (i, 0, j)),
                pl.BlockSpec((1, C, 1), lambda i, j: (0, 0, 0)),
                pl.BlockSpec((1, C, 1), lambda i, j: (0, 0, 0)),
            ],
            out_specs=pl.BlockSpec((bn, C, t), lambda i, j: (i, 0, j)),
        ),
        compiler_params=pltpu.CompilerParams(
            dimension_semantics=("parallel", "parallel"),
            vmem_limit_bytes=_vmem_limit(bn * C * t * itemsize),
        ),
    )(x3, w3, b3)
    return out.reshape(x.shape)


# ----------------------------------------------------------------------------
# Pure-JAX references (mirror the PyTorch module exactly)
# ----------------------------------------------------------------------------
def ref_channels_last(x, w, b, eps):
    xf = x.astype(jnp.float32)
    mean = jnp.mean(xf, axis=-1, keepdims=True)
    var = jnp.mean((xf - mean) ** 2, axis=-1, keepdims=True)
    return ((xf - mean) * lax.rsqrt(var + eps) * w.astype(jnp.float32)
            + b.astype(jnp.float32)).astype(x.dtype)


def ref_channels_first(x, w, b, eps):
    xf = x.astype(jnp.float32)
    u = jnp.mean(xf, axis=1, keepdims=True)
    s = jnp.mean((xf - u) ** 2, axis=1, keepdims=True)
    xn = (xf - u) / jnp.sqrt(s + eps)
    shape = (1, x.shape[1]) + (1,) * (x.ndim - 2)
    return (w.astype(jnp.float32).reshape(shape) * xn
            + b.astype(jnp.float32).reshape(shape)).astype(x.dtype)


# ----------------------------------------------------------------------------
if __name__ == "__main__":
    key = jax.random.PRNGKey(0)
    ks = jax.random.split(key, 8)
    eps = 1e-6   # module default (ConvNeXt-style); torch.nn.LayerNorm default is 1e-5

    def check(out, ref, atol):
        assert out.shape == ref.shape and out.dtype == ref.dtype
        err = float(jnp.max(jnp.abs(out.astype(jnp.float32) - ref.astype(jnp.float32))))
        assert err <= atol, f"max abs err {err} > {atol}"

    # --- channels_last, lane-dense C -----------------------------------------
    N, H, W, C = 2, 16, 16, 128
    w = 1.0 + 0.1 * jax.random.normal(ks[0], (C,), jnp.float32)
    b = 0.1 * jax.random.normal(ks[1], (C,), jnp.float32)
    x = jax.random.normal(ks[2], (N, H, W, C), jnp.float32)
    out = jax.block_until_ready(layer_norm_channels_last(x, w, b, eps=eps))
    check(out, ref_channels_last(x, w, b, eps), 1e-4)

    # --- channels_last, ragged rows + non-128-multiple C (masked boundary) ---
    C2 = 96
    w2 = 1.0 + 0.1 * jax.random.normal(ks[3], (C2,), jnp.float32)
    b2 = 0.1 * jax.random.normal(ks[4], (C2,), jnp.float32)
    x2 = jax.random.normal(ks[5], (2, 7, 9, C2), jnp.float32)
    out2 = jax.block_until_ready(layer_norm_channels_last(x2, w2, b2, eps=eps))
    check(out2, ref_channels_last(x2, w2, b2, eps), 1e-4)

    # --- channels_last, bf16 input (f32 stats inside the kernel) -------------
    xb = x.astype(jnp.bfloat16)
    outb = jax.block_until_ready(layer_norm_channels_last(xb, w, b, eps=eps))
    check(outb, ref_channels_last(xb, w, b, eps), 6e-2)

    # --- channels_first -------------------------------------------------------
    xcf = jax.random.normal(ks[6], (2, C, 16, 16), jnp.float32)
    outcf = jax.block_until_ready(layer_norm_channels_first(xcf, w, b, eps=eps))
    check(outcf, ref_channels_first(xcf, w, b, eps), 1e-4)

    # --- channels_first, ragged batch / spatial -------------------------------
    xcf2 = jax.random.normal(ks[7], (3, C2, 5, 7), jnp.float32)
    outcf2 = jax.block_until_ready(layer_norm_channels_first(xcf2, w2, b2, eps=eps))
    check(outcf2, ref_channels_first(xcf2, w2, b2, eps), 1e-4)

    print("KERNEL_OK")
</pallas_src>

<mosaic_0001>
module attributes {stable_mosaic.version = 11 : i64} {
  func.func @_ln_channels_last_kernel(%arg0: i32, %arg1: memref<64x128xf32, #tpu.memory_space<vmem>>, %arg2: memref<1x128xf32, #tpu.memory_space<vmem>>, %arg3: memref<1x128xf32, #tpu.memory_space<vmem>>, %arg4: memref<64x128xf32, #tpu.memory_space<vmem>>) attributes {dimension_semantics = [#tpu.dimension_semantics<parallel>], iteration_bounds = array<i64: 8>, scalar_prefetch = 0 : i64, scratch_operands = 0 : i64, tpu.core_type = #tpu.core_type<tc>, window_params = [{transform_indices = @transform_0, window_bounds = array<i64: 64, 128>}, {pipeline_mode = #tpu.pipeline_mode<synchronous>, transform_indices = @transform_1, window_bounds = array<i64: 1, 128>}, {pipeline_mode = #tpu.pipeline_mode<synchronous>, transform_indices = @transform_2, window_bounds = array<i64: 1, 128>}, {transform_indices = @transform_3, window_bounds = array<i64: 64, 128>}]} {
    %c0 = arith.constant 0 : index
    %c0_0 = arith.constant 0 : index
    %0 = vector.load %arg1[%c0, %c0_0] : memref<64x128xf32, #tpu.memory_space<vmem>>, vector<64x128xf32>
    %cst = arith.constant dense<0.000000e+00> : vector<64xf32>
    %1 = vector.multi_reduction <add>, %0, %cst [1] : vector<64x128xf32> to vector<64xf32>
    %2 = vector.shape_cast %1 : vector<64xf32> to vector<64x1xf32>
    %cst_1 = arith.constant 7.812500e-03 : f32
    %3 = vector.broadcast %cst_1 : f32 to vector<64x1xf32>
    %4 = arith.mulf %2, %3 : vector<64x1xf32>
    %5 = arith.mulf %0, %0 : vector<64x128xf32>
    %cst_2 = arith.constant dense<0.000000e+00> : vector<64xf32>
    %6 = vector.multi_reduction <add>, %5, %cst_2 [1] : vector<64x128xf32> to vector<64xf32>
    %7 = vector.shape_cast %6 : vector<64xf32> to vector<64x1xf32>
    %cst_3 = arith.constant 7.812500e-03 : f32
    %8 = vector.broadcast %cst_3 : f32 to vector<64x1xf32>
    %9 = arith.mulf %7, %8 : vector<64x1xf32>
    %10 = arith.mulf %4, %4 : vector<64x1xf32>
    %11 = arith.subf %9, %10 : vector<64x1xf32>
    %cst_4 = arith.constant 0.000000e+00 : f32
    %12 = vector.broadcast %cst_4 : f32 to vector<64x1xf32>
    %13 = arith.maximumf %11, %12 : vector<64x1xf32>
    %cst_5 = arith.constant 9.99999997E-7 : f32
    %14 = vector.broadcast %cst_5 : f32 to vector<64x1xf32>
    %15 = arith.addf %13, %14 : vector<64x1xf32>
    %16 = math.rsqrt %15 : vector<64x1xf32>
    %17 = vector.broadcast %4 : vector<64x1xf32> to vector<64x128xf32>
    %18 = arith.subf %0, %17 : vector<64x128xf32>
    %19 = vector.broadcast %16 : vector<64x1xf32> to vector<64x128xf32>
    %20 = arith.mulf %18, %19 : vector<64x128xf32>
    %c0_6 = arith.constant 0 : index
    %c0_7 = arith.constant 0 : index
    %21 = vector.load %arg2[%c0_6, %c0_7] : memref<1x128xf32, #tpu.memory_space<vmem>>, vector<1x128xf32>
    %22 = vector.broadcast %21 : vector<1x128xf32> to vector<64x128xf32>
    %23 = arith.mulf %20, %22 : vector<64x128xf32>
    %c0_8 = arith.constant 0 : index
    %c0_9 = arith.constant 0 : index
    %24 = vector.load %arg3[%c0_8, %c0_9] : memref<1x128xf32, #tpu.memory_space<vmem>>, vector<1x128xf32>
    %25 = vector.broadcast %24 : vector<1x128xf32> to vector<64x128xf32>
    %26 = arith.addf %23, %25 : vector<64x128xf32>
    %c0_10 = arith.constant 0 : index
    %c0_11 = arith.constant 0 : index
    %27 = vector.load %arg4[%c0_10, %c0_11] : memref<64x128xf32, #tpu.memory_space<vmem>>, vector<64x128xf32>
    tpu.vector_store %arg4[%c0_10, %c0_11], %26 {strides = array<i32>} : memref<64x128xf32, #tpu.memory_space<vmem>>, vector<64x128xf32>,
    return
  }
  func.func @transform_0(%arg0: i32) -> (i32, i32) {
    %c0_i32 = arith.constant 0 : i32
    %c0_i32_0 = arith.constant 0 : i32
    return %arg0, %c0_i32 : i32, i32
  }
  func.func @transform_1(%arg0: i32) -> (i32, i32) {
    %c0_i32 = arith.constant 0 : i32
    %c0_i32_0 = arith.constant 0 : i32
    %c0_i32_1 = arith.constant 0 : i32
    return %c0_i32, %c0_i32_0 : i32, i32
  }
  func.func @transform_2(%arg0: i32) -> (i32, i32) {
    %c0_i32 = arith.constant 0 : i32
    %c0_i32_0 = arith.constant 0 : i32
    %c0_i32_1 = arith.constant 0 : i32
    return %c0_i32, %c0_i32_0 : i32, i32
  }
  func.func @transform_3(%arg0: i32) -> (i32, i32) {
    %c0_i32 = arith.constant 0 : i32
    %c0_i32_0 = arith.constant 0 : i32
    return %arg0, %c0_i32 : i32, i32
  }
}

</mosaic_0001>

<bundles_post_ra>
// kernel: layer_norm_channels_last.1
= control target key start
LH: loop header
LB: loop body
LE: loop exit
PB: predicated region body
PF: predicated region fallthrough
CT: control target
= control target key end

     0   :  { %8 = vsyncpa [#allocation3], 0  ;;  %s1026_s0 = inlined_call_operand.hbm [shape: f32[512,128], index: 0, kind: input, shape index: {}]   ;;  %s1027_s1 = inlined_call_operand.vmem [shape: f32[1,128], index: 1, kind: input, shape index: {}]   ;;  %s1028_s2 = inlined_call_operand.vmem [shape: f32[1,128], index: 2, kind: input, shape index: {}]   ;;  %s1029_s3 = inlined_call_operand.hbm [shape: f32[512,128], index: 3, kind: output, shape index: {}]  }
   0x1   :  { %10 = vsyncpa [#allocation3 + $0x1], 0 }
   0x2   :  { %11 = vsyncpa [#allocation4], 0 }
   0x3   :  { %13 = vsyncpa [#allocation4 + $0x1], 0  ;;  %s712_s12 = smov 0   ;;  %s714_s13 = smov 0  }
   0x4   :  { %s716_s14 = smov 0   ;;  %s718_s15 = smov 0  }
   0x5 LB: > { %s733_s16 = sadd.s32 4294967295, %s686_s15   ;;  %s506_s17 = sadd.s32 4294967294, %s686_s15   ;;  %s686_s15 = sphi %s718_s15, %s1038_s15   ;;  %s682_s14 = sphi %s716_s14, %s1037_s14   ;;  %s678_s13 = sphi %s714_s13, %s1036_s13   ;;  %s674_s12 = sphi %s712_s12, %s1035_s12  }
   0x6   : > { %s737_s18 = sadd.s32 1, %s686_s15   ;;  %s26_s19 = sadd.s32 1, %s682_s14 }
   0x7   : > { %s23_s20 = ssub.s32 %s686_s15, %s737_s18  ;;  %p33_p0 = scmp.ne.s32.totalorder %s682_s14, %s678_s13 }
   0x8   : > { %p24_p1 = scmp.eq.s32.totalorder %s23_s20, 0  ;;  %p34_p2 = scmp.eq.s32.totalorder %s686_s15, 0 }
   0x9   : > { %p39_p3 = scmp.ne.s32.totalorder %s678_s13, %s674_s12  ;;  %p40_p4 = scmp.eq.s32.totalorder %s733_s16, 0 }
   0xa   : > { %s749_s21 = scalar_select %p24_p1, %s682_s14, %s26_s19  }
   0xb   : > { %p751_p5 = por %p34_p2, %p33_p0  ;;  %p755_p6 = por %p40_p4, %p39_p3 }
   0xc   : > { %p105_p7 = scmp.eq.s32.totalorder %s733_s16, 7  ;;  %p111_p8 = scmp.eq.s32.totalorder %s506_s17, 7 }
   0xd   : > { %p534_p9 = scmp.lt.s32.totalorder %s686_s15, 8  ;;  %s137_s26 = sand.u32 1, %s682_s14  }
   0xe   : > { %p761_p10 = por %p105_p7, %p33_p0  ;;  %p765_p11 = por %p111_p8, %p39_p3 }
   0xf   : > { %s520_s27 = sshll.u32 %s686_s15, 6  ;;  %s509_s28 = sshll.u32 %s137_s26, 6 }
  0x10   : > { %s146_s4 = scalar_lea.hbm %s1026_s0, %s520_s27  ;;  %s141_s6 = scalar_lea.vmem [#allocation2], %s509_s28 }
  0x11   : > { %s147_s5 = sshll.u32 %s146_s4, 4  ;;  %s149_s7 = sshll.u32 %s141_s6, 4  ;;  %s148_s5 = int_to_ptr.hbm [resolvable:$true] %s147_s5  ;;  %s150_s7 = int_to_ptr.vmem [resolvable:$true] %s149_s7 }
  0x12   : > { %p776_p12 = pnand %p534_p9, %p751_p5  ;;  %p512_p13 = scmp.ge.s32.totalorder %s686_s15, 1 }
  0x13   : > { %p157_p0 = scmp.lt.s32.totalorder %s686_s15, 9  ;;  %s138_s9 = scalar_lea.sflag [#allocation3], %s137_s26 }
  0x14   : > { %s590_s10 = sshra.s32 %s148_s5, 4  ;;  %p594_p2 = pneg %p776_p12  ;;  %s591_s10 = int_to_ptr.hbm [resolvable:$true] %s590_s10 }
  0x15   : > { %s592_s11 = scalar_lea.hbm %s591_s10, 64  ;;  %s597_s20 = scalar_lea.hbm %s1026_s0, 512 }
  0x16   : > { %p593_p1 = scmp.ne.s32.totalorder %s591_s10, %s592_s11  ;;  %p598_p5 = scmp.lt.s32.totalorder %s591_s10, %s1026_s0 }
  0x17   : > { %p599_p7 = scmp.lt.s32.totalorder %s597_s20, %s592_s11 }
  0x18   : > { %p595_p3 = pnand %p594_p2, %p593_p1 }
  0x19   : > { %p600_p8 = por %p599_p7, %p598_p5 }
  0x1a   : > { %p596_p4 = pneg %p595_p3 }
  0x1c   : > { %p601_p9 = pnand %p600_p8, %p596_p4 }
  0x1e   : > { %604 = shalt.err (!%p601_p9)
}
  0x1f   : > { %s688_s26 = smov 128   ;;  %s689_s28 = smov 8  }
  0x20   : > { %529 = dma.hbm_to_vmem [thread:$0]  (!%p776_p12), %s148_s5, 1024, %s150_s7, %s138_s9, %s688_s26, %s688_s26, %s689_s28  }
  0x21   : > { %p158_p1 = pnand %p512_p13, %p157_p0 }
  0x22   : > { %s797_s29 = sand.u32 (!%p158_p1), 1, %s678_s13  }
  0x23   : > { %161 = sbr.rel (%p158_p1) target bundleno = 236 (0xec), region = 32  ;;  %s513_s30 = sshll.u32 (!%p158_p1), %s797_s29, 6 }
  0x24   : > { %s164_s4 = scalar_lea.sflag (!%p158_p1), [#allocation3], %s797_s29  ;;  %s167_s6 = scalar_lea.vmem (!%p158_p1), [#allocation2], %s513_s30 }
  0x28   : > { %665 = dma.done.wait (%p755_p6), %s164_s4, 1024  }
  0x29   : > { %667 = vsyncadd (%p755_p6), %s164_s4, 4294966272  ;;  %v807_v0 = vld [vmem:[%s167_s6 + $0x20] sm:$0xff]  ;;  %v809_v1 = vld [vmem:[%s167_s6 + $0x10] sm:$0xff]  ;;  %s935_s9 = scalar_lea.vmem [#allocation5], %s513_s30  ;;  %s521_s10 = sshll.u32 %s733_s16, 6 }
  0x2a   : > { %v811_v2 = vld [vmem:[%s167_s6] sm:$0xff]  ;;  %209 = vadd.xlane.f32.xlu2 %v807_v0  ;;  %205 = vadd.xlane.f32.xlu1 %v809_v1  ;;  %v816_v3 = vld [vmem:[%s167_s6 + $0x28] sm:$0xff]  ;;  %v818_v4 = vld [vmem:[%s167_s6 + $0x18] sm:$0xff]  ;;  %v227_v9 = vmul.f32 %v809_v1, %v809_v1  ;;  %v229_v14 = vmul.f32 %v807_v0, %v807_v0  ;;  %s429_s19 = scalar_lea.hbm %s1029_s3, %s521_s10  ;;  %s430_s16 = sshll.u32 %s935_s9, 4  ;;  %s431_s16 = int_to_ptr.vmem [resolvable:$true] %s430_s16 }
  0x2b   : > { %201 = vadd.xlane.f32.xlu0 %v811_v2  ;;  %v820_v5 = vld [vmem:[%s167_s6 + $0x8] sm:$0xff]  ;;  %v225_v6 = vmul.f32 %v811_v2, %v811_v2  ;;  %v827_v7 = vld [vmem:[%s167_s6 + $0x38] sm:$0xff]  ;;  %v829_v8 = vld [vmem:[%s167_s6 + $0x30] sm:$0xff]  ;;  %v228_v10 = vmul.f32 %v818_v4, %v818_v4  ;;  %v230_v12 = vmul.f32 %v816_v3, %v816_v3  ;;  %s432_s20 = sshll.u32 %s429_s19, 4  ;;  %s418_s22 = scalar_lea.sflag [#allocation4], %s797_s29  ;;  %s433_s20 = int_to_ptr.hbm [resolvable:$true] %s432_s20 }
  0x2c   : > { %v226_v11 = vmul.f32 %v820_v5, %v820_v5  ;;  %v231_v13 = vmul.f32 %v829_v8, %v829_v8  ;;  %v232_v15 = vmul.f32 %v827_v7, %v827_v7  ;;  %s634_s27 = sshra.s32 %s433_s20, 4  ;;  %s640_s4 = scalar_lea.hbm %s1029_s3, 512  ;;  %s635_s27 = int_to_ptr.hbm [resolvable:$true] %s634_s27 }
  0x2d   : > { %s636_s26 = scalar_lea.hbm %s635_s27, 64  ;;  %p641_p0 = scmp.lt.s32.totalorder %s635_s27, %s1029_s3 }
  0x2e   : > { %p637_p6 = scmp.ne.s32.totalorder %s635_s27, %s636_s26  ;;  %p642_p2 = scmp.lt.s32.totalorder %s640_s4, %s636_s26 }
  0x30   : > { %p638_p12 = pnand %p637_p6, %p761_p10  ;;  %p643_p3 = por %p642_p2, %p641_p0 }
  0x32   : > { %211 = vadd.xlane.f32.xlu2 %v816_v3  ;;  %207 = vadd.xlane.f32.xlu1 %v818_v4  ;;  %p639_p13 = pneg %p638_p12 }
  0x33   : > { %203 = vadd.xlane.f32.xlu0 %v820_v5 }
  0x34   : > { %p644_p4 = pnand %p643_p3, %p639_p13 }
  0x3a   : > { %215 = vadd.xlane.f32.xlu1 %v827_v7  ;;  %233 = vadd.xlane.f32.xlu2 %v225_v6 }
  0x3b   : > { %213 = vadd.xlane.f32.xlu0 %v829_v8 }
  0x42   : > { %237 = vadd.xlane.f32.xlu1 %v227_v9  ;;  %239 = vadd.xlane.f32.xlu2 %v228_v10 }
  0x43   : > { %235 = vadd.xlane.f32.xlu0 %v226_v11 }
  0x4a   : > { %243 = vadd.xlane.f32.xlu1 %v230_v12  ;;  %245 = vadd.xlane.f32.xlu2 %v231_v13 }
  0x4b   : > { %241 = vadd.xlane.f32.xlu0 %v229_v14 }
  0x53   : > { %247 = vadd.xlane.f32.xlu0 %v232_v15 }
  0x9d   : > { %v210_v16 = vpop.xlane.xlu2 %209  ;;  %v206_v17 = vpop.xlane.xlu1 %205 }
  0x9e   : > { %v202_v18 = vpop.xlane.xlu0 %201  ;;  %v853_v29 = vmul.f32 0.0078125, %v206_v17  ;;  %v867_v49 = vmul.f32 0.0078125, %v210_v16 }
  0x9f   : > { %v847_v22 = vmul.f32 0.0078125, %v202_v18 }
  0xa0   : > { %v259_v34 = vmul.f32 %v853_v29, %v853_v29  ;;  %v261_v62 = vmul.f32 %v867_v49, %v867_v49 }
  0xa1   : > { %v257_v25 = vmul.f32 %v847_v22, %v847_v22 }
  0xa5   : > { %v212_v19 = vpop.xlane.xlu2 %211  ;;  %v208_v20 = vpop.xlane.xlu1 %207 }
  0xa6   : > { %v204_v21 = vpop.xlane.xlu0 %203  ;;  %v855_v30 = vmul.f32 0.0078125, %v208_v20  ;;  %v865_v46 = vmul.f32 0.0078125, %v212_v19 }
  0xa7   : > { %v857_v32 = vmul.f32 0.0078125, %v204_v21 }
  0xa8   : > { %v260_v37 = vmul.f32 %v855_v30, %v855_v30  ;;  %v262_v59 = vmul.f32 %v865_v46, %v865_v46 }
  0xa9   : > { %v258_v41 = vmul.f32 %v857_v32, %v857_v32 }
  0xad   : > { %v849_v23 = vpop.xlane.xlu1 %215  ;;  %v234_v24 = vpop.xlane.xlu2 %233 }
  0xae   : > { %v214_v26 = vpop.xlane.xlu0 %213  ;;  %v249_v27 = vmul.f32 0.0078125, %v234_v24 }
  0xaf   : > { %v869_v52 = vmul.f32 0.0078125, %v214_v26 }
  0xb0   : > { %v265_v28 = vsub.f32 %v249_v27, %v257_v25 }
  0xb1   : > { %v263_v9 = vmul.f32 %v869_v52, %v869_v52 }
  0xb2   : > { %v273_v31 = vmax.f32 %v265_v28, 0.0  ;;  %v369_v28 = vsub.f32 %v811_v2, %v847_v22 }
  0xb4   : > { %v281_v33 = vadd.f32 1e-06, %v273_v31  ;;  %v898_v31 = vmul.f32 0.0078125, %v849_v23  ;;  %v370_v23 = vsub.f32 %v820_v5, %v857_v32 }
  0xb5   : > { %v238_v35 = vpop.xlane.xlu1 %237  ;;  %v240_v36 = vpop.xlane.xlu2 %239 }
  0xb6   : > { %574 = vrsqrt.f32 %v281_v33  ;;  %v251_v38 = vmul.f32 0.0078125, %v238_v35  ;;  %v236_v39 = vpop.xlane.xlu0 %235  ;;  %v252_v40 = vmul.f32 0.0078125, %v240_v36  ;;  %vm295_vm1 = vweird.f32 %v281_v33 }
  0xb7   : > { %v250_v42 = vmul.f32 0.0078125, %v236_v39  ;;  %v371_v36 = vsub.f32 %v809_v1, %v853_v29 }
  0xb8   : > { %v267_v43 = vsub.f32 %v251_v38, %v259_v34  ;;  %v268_v44 = vsub.f32 %v252_v40, %v260_v37  ;;  %v917_v38 = vld [vmem:[%s1028_s2] ss:$0 sm:$0xff] }
  0xb9   : > { %v266_v45 = vsub.f32 %v250_v42, %v258_v41 }
  0xba   : > { %v275_v47 = vmax.f32 %v267_v43, 0.0  ;;  %v276_v48 = vmax.f32 %v268_v44, 0.0  ;;  %v264_v43 = vmul.f32 %v898_v31, %v898_v31 }
  0xbb   : > { %v274_v50 = vmax.f32 %v266_v45, 0.0 }
  0xbc   : > { %v575_v51 = vpop.eup %574  ;;  %v871_v53 = vadd.f32 1e-06, %v275_v47  ;;  %v873_v54 = vadd.f32 1e-06, %v276_v48 }
  0xbd   : > { %v290_v55 = vmul.f32 %v575_v51, %v281_v33  ;;  %v875_v56 = vadd.f32 1e-06, %v274_v50  ;;  %v244_v57 = vpop.xlane.xlu1 %243  ;;  %v246_v58 = vpop.xlane.xlu2 %245  ;;  %vm296_vm0 = vweird.f32 %v575_v51  ;;  %v903_v33 = vld [vmem:[%s1027_s1] ss:$0 sm:$0xff] }
  0xbe   : > { %576 = vrsqrt.f32 %v871_v53  ;;  %v254_v60 = vmul.f32 0.0078125, %v244_v57  ;;  %v242_v61 = vpop.xlane.xlu0 %241  ;;  %v255_v11 = vmul.f32 0.0078125, %v246_v58  ;;  %vm297_vm2 = vmor %vm295_vm1, %vm296_vm0  ;;  %vm315_vm3 = vweird.f32 %v871_v53 }
  0xbf   : > { %v291_v63 = vmul.f32 %v575_v51, %v290_v55  ;;  %578 = vrsqrt.f32 %v875_v56  ;;  %v253_v6 = vmul.f32 0.0078125, %v242_v61  ;;  %vm305_vm8 = vweird.f32 %v875_v56 }
  0xc0   : > { %580 = vrsqrt.f32 %v873_v54  ;;  %v270_v10 = vsub.f32 %v254_v60, %v262_v59  ;;  %v271_v15 = vsub.f32 %v255_v11, %v263_v9  ;;  %vm325_vm9 = vweird.f32 %v873_v54 }
  0xc1   : > { %v292_v12 = vmul.f32 0.5, %v291_v63  ;;  %v269_v13 = vsub.f32 %v253_v6, %v261_v62 }
  0xc2   : > { %v278_v14 = vmax.f32 %v270_v10, 0.0  ;;  %v279_v26 = vmax.f32 %v271_v15, 0.0 }
  0xc3   : > { %v293_v16 = vsub.f32 1.5, %v292_v12  ;;  %v277_v17 = vmax.f32 %v269_v13, 0.0 }
  0xc4   : > { %v577_v18 = vpop.eup %576  ;;  %v886_v19 = vadd.f32 1e-06, %v278_v14  ;;  %v922_v29 = vadd.f32 1e-06, %v279_v26 }
  0xc5   : > { %v888_v20 = vpop.eup %578  ;;  %v294_v21 = vmul.f32 %v575_v51, %v293_v16  ;;  %v310_v24 = vmul.f32 %v577_v18, %v871_v53  ;;  %v891_v25 = vadd.f32 1e-06, %v277_v17  ;;  %vm316_vm4 = vweird.f32 %v577_v18 }
  0xc6   : > { %v893_v27 = vpop.eup %580  ;;  %v300_v34 = vmul.f32 %v888_v20, %v875_v56  ;;  %582 = vrsqrt.f32 %v886_v19  ;;  %v248_v35 = vpop.xlane.xlu0 %247  ;;  %vm306_vm5 = vweird.f32 %v888_v20  ;;  %vm317_vm7 = vmor %vm315_vm3, %vm316_vm4  ;;  %v372_v53 = vsub.f32 %v818_v4, %v855_v30 }
  0xc7   : > { %v298_v37 = vsel %vm297_vm2, %v575_v51, %v294_v21  ;;  %v311_v2 = vmul.f32 %v577_v18, %v310_v24  ;;  %v320_v22 = vmul.f32 %v893_v27, %v873_v54  ;;  %584 = vrsqrt.f32 %v891_v25  ;;  %vm307_vm10 = vmor %vm305_vm8, %vm306_vm5 }
  0xc8   : > { %v377_v39 = vmul.f32 %v369_v28, %v298_v37  ;;  %v301_v40 = vmul.f32 %v888_v20, %v300_v34  ;;  %v256_v42 = vmul.f32 0.0078125, %v248_v35  ;;  %586 = vrsqrt.f32 %v922_v29 }
  0xc9   : > { %v312_v41 = vmul.f32 0.5, %v311_v2  ;;  %v321_v1 = vmul.f32 %v893_v27, %v320_v22  ;;  %vm326_vm6 = vweird.f32 %v893_v27  ;;  %vm345_vm13 = vweird.f32 %v886_v19 }
  0xca   : > { %v389_v5 = vmul.f32 %v903_v33, %v377_v39  ;;  %v302_v32 = vmul.f32 0.5, %v301_v40  ;;  %v272_v51 = vsub.f32 %v256_v42, %v264_v43  ;;  %vm327_vm11 = vmor %vm325_vm9, %vm326_vm6  ;;  %v374_v35 = vsub.f32 %v816_v3, %v865_v46 }
  0xcb   : > { %v313_v44 = vsub.f32 1.5, %v312_v41  ;;  %v322_v45 = vmul.f32 0.5, %v321_v1  ;;  %vm335_vm0 = vweird.f32 %v891_v25  ;;  %vm355_vm3 = vweird.f32 %v922_v29 }
  0xcc   : > { %v583_v47 = vpop.eup %582  ;;  %v401_v48 = vadd.f32 %v917_v38, %v389_v5  ;;  %v303_v50 = vsub.f32 1.5, %v302_v32  ;;  %v280_v61 = vmax.f32 %v272_v51, 0.0 }
  0xcd   : > { %v314_v55 = vmul.f32 %v577_v18, %v313_v44  ;;  %v323_v57 = vsub.f32 1.5, %v322_v45  ;;  %v340_v58 = vmul.f32 %v583_v47, %v886_v19  ;;  %v585_v59 = vpop.eup %584  ;;  %vm346_vm12 = vweird.f32 %v583_v47 }
  0xce   : > { %409 = vst [vmem:[%s935_s9] sm:$0xff] %v401_v48  ;;  %v304_v60 = vmul.f32 %v888_v20, %v303_v50  ;;  %v330_v9 = vmul.f32 %v585_v59, %v891_v25  ;;  %v953_v54 = vadd.f32 1e-06, %v280_v61  ;;  %v587_v56 = vpop.eup %586  ;;  %vm336_vm14 = vweird.f32 %v585_v59  ;;  %vm347_vm15 = vmor %vm345_vm13, %vm346_vm12 }
  0xcf   : > { %v318_v62 = vsel %vm317_vm7, %v577_v18, %v314_v55  ;;  %v324_v63 = vmul.f32 %v893_v27, %v323_v57  ;;  %v341_v6 = vmul.f32 %v583_v47, %v340_v58  ;;  %v350_v4 = vmul.f32 %v587_v56, %v922_v29  ;;  %vm337_vm1 = vmor %vm335_vm0, %vm336_vm14 }
  0xd0   : > { %v379_v10 = vmul.f32 %v371_v36, %v318_v62  ;;  %v308_v11 = vsel %vm307_vm10, %v888_v20, %v304_v60  ;;  %v331_v15 = vmul.f32 %v585_v59, %v330_v9  ;;  %588 = vrsqrt.f32 %v953_v54 }
  0xd1   : > { %v378_v12 = vmul.f32 %v370_v23, %v308_v11  ;;  %v328_v13 = vsel %vm327_vm11, %v893_v27, %v324_v63  ;;  %v342_v14 = vmul.f32 0.5, %v341_v6  ;;  %v351_v26 = vmul.f32 %v587_v56, %v350_v4 }
  0xd2   : > { %v391_v16 = vmul.f32 %v903_v33, %v379_v10  ;;  %v380_v17 = vmul.f32 %v372_v53, %v328_v13  ;;  %v332_v20 = vmul.f32 0.5, %v331_v15  ;;  %v373_v19 = vsub.f32 %v807_v0, %v867_v49 }
  0xd3   : > { %v390_v30 = vmul.f32 %v903_v33, %v378_v12  ;;  %v343_v18 = vsub.f32 1.5, %v342_v14  ;;  %v352_v37 = vmul.f32 0.5, %v351_v26  ;;  %vm356_vm2 = vweird.f32 %v587_v56 }
  0xd4   : > { %v403_v21 = vadd.f32 %v917_v38, %v391_v16  ;;  %v392_v24 = vmul.f32 %v903_v33, %v380_v17  ;;  %v333_v34 = vsub.f32 1.5, %v332_v20  ;;  %v375_v0 = vsub.f32 %v829_v8, %v869_v52  ;;  %vm357_vm4 = vmor %vm355_vm3, %vm356_vm2 }
  0xd5   : > { %v402_v27 = vadd.f32 %v917_v38, %v390_v30  ;;  %v344_v28 = vmul.f32 %v583_v47, %v343_v18  ;;  %v353_v39 = vsub.f32 1.5, %v352_v37  ;;  %vm365_vm6 = vweird.f32 %v953_v54 }
  0xd6   : > { %411 = vst [vmem:[%s935_s9 + $0x10] sm:$0xff] %v403_v21  ;;  %v404_v36 = vadd.f32 %v917_v38, %v392_v24  ;;  %v334_v22 = vmul.f32 %v585_v59, %v333_v34  ;;  %v589_v3 = vpop.eup %588  ;;  %v376_v48 = vsub.f32 %v827_v7, %v898_v31 }
  0xd7   : > { %410 = vst [vmem:[%s935_s9 + $0x8] sm:$0xff] %v402_v27  ;;  %v348_v2 = vsel %vm347_vm15, %v583_v47, %v344_v28  ;;  %v354_v1 = vmul.f32 %v587_v56, %v353_v39  ;;  %v360_v25 = vmul.f32 %v589_v3, %v953_v54  ;;  %vm366_vm5 = vweird.f32 %v589_v3 }
  0xd8   : > { %412 = vst [vmem:[%s935_s9 + $0x18] sm:$0xff] %v404_v36  ;;  %v382_v23 = vmul.f32 %v374_v35, %v348_v2  ;;  %v338_v46 = vsel %vm337_vm1, %v585_v59, %v334_v22  ;;  %vm367_vm7 = vmor %vm365_vm6, %vm366_vm5 }
  0xd9   : > { %v381_v41 = vmul.f32 %v373_v19, %v338_v46  ;;  %v358_v43 = vsel %vm357_vm4, %v587_v56, %v354_v1  ;;  %v361_v5 = vmul.f32 %v589_v3, %v360_v25 }
  0xda   : > { %v394_v40 = vmul.f32 %v903_v33, %v382_v23  ;;  %v383_v29 = vmul.f32 %v375_v0, %v358_v43 }
  0xdb   : > { %v393_v42 = vmul.f32 %v903_v33, %v381_v41  ;;  %v362_v44 = vmul.f32 0.5, %v361_v5 }
  0xdc   : > { %v406_v49 = vadd.f32 %v917_v38, %v394_v40  ;;  %v395_v45 = vmul.f32 %v903_v33, %v383_v29 }
  0xdd   : > { %v405_v32 = vadd.f32 %v917_v38, %v393_v42  ;;  %v363_v47 = vsub.f32 1.5, %v362_v44 }
  0xde   : > { %414 = vst [vmem:[%s935_s9 + $0x28] sm:$0xff] %v406_v49  ;;  %v407_v8 = vadd.f32 %v917_v38, %v395_v45 }
  0xdf   : > { %413 = vst [vmem:[%s935_s9 + $0x20] sm:$0xff] %v405_v32  ;;  %v364_v52 = vmul.f32 %v589_v3, %v363_v47 }
  0xe0   : > { %415 = vst [vmem:[%s935_s9 + $0x30] sm:$0xff] %v407_v8 }
  0xe1   : > { %v368_v50 = vsel %vm367_vm7, %v589_v3, %v364_v52 }
  0xe2   : > { %v384_v51 = vmul.f32 %v376_v48, %v368_v50 }
  0xe4   : > { %v396_v55 = vmul.f32 %v903_v33, %v384_v51 }
  0xe6   : > { %v408_v57 = vadd.f32 %v917_v38, %v396_v55 }
  0xe8   : > { %416 = vst [vmem:[%s935_s9 + $0x38] sm:$0xff] %v408_v57 }
  0xe9   : > { %647 = shalt.err (!%p644_p4)
}
  0xea   : > { %s690_s29 = smov 128   ;;  %s691_s5 = smov 8  }
  0xeb   : > { %524 = dma.vmem_to_hbm [thread:$0]  (%p761_p10), %s431_s16, 1024, %s433_s20, %s418_s22, %s690_s29, %s690_s29, %s691_s5  }
  0xec PF: > { %p535_p5 = scmp.ge.s32.totalorder %s686_s15, 2  ;;  %s447_s7 = sand.u32 1, %s674_s12  }
  0xed   : > { %s448_s8 = scalar_lea.sflag [#allocation4], %s447_s7 }
  0xee   : > { %p531_p7 = pnand %p535_p5, %p765_p11 }
  0xf0   : > { %p532_p8 = pneg %p531_p7 }
  0xf2   : > { %669 = dma.done.wait (%p532_p8), %s448_s8, 1024  }
  0xf3   : > { %671 = vsyncadd (%p532_p8), %s448_s8, 4294966272  ;;  %p16_p9 = scmp.ge.s32.totalorder %s737_s18, 10   ;;  %s1035_s12 = smov %s678_s13 }
  0xf4   : > { %s1036_s13 = smov %s682_s14  ;;  %s1037_s14 = smov %s749_s21 }
  0xf5   : > { %s1038_s15 = smov %s737_s18  ;;  %18 = sbr.rel (!%p16_p9) target bundleno = 5 (0x5), region = 77 }
  0xfa   :  { %454 = vsyncpa [#allocation3], 1 }
  0xfb   :  { %456 = vsyncpa [#allocation3 + $0x1], 1 }
  0xfc   :  { %457 = vsyncpa [#allocation4], 1 }
  0xfd   :  { %459 = vsyncpa [#allocation4 + $0x1], 1 }

</bundles_post_ra>
